<compile_context>
chip_gen: v5e
topology: v5e:2x2
jax: 0.10.0
libtpu: 0.0.40
codegen_flags: <defaults>
</compile_context>

<pallas_src>
import jax
import jax.numpy as jnp
from jax.experimental import pallas as pl
from jax.experimental.pallas import tpu as pltpu


def _drop_path_kernel(scale_ref, x_ref, o_ref):
    # scale_ref: VMEM (TB, 1) float32 -- 0.0 (dropped) or 1/keep_prob (kept)
    # x_ref/o_ref: VMEM (TB, TILE_C) tiles in x's native dtype
    o_ref[...] = x_ref[...] * scale_ref[...].astype(x_ref.dtype)


def _choose_tiles(B, C, itemsize):
    """Pick (batch_tile, feature_tile) for a lane-dense streaming multiply."""
    # Batch (sublane) tile: pack up to 8 samples per step.  TB must be a
    # multiple of 8 or equal the full batch dim (the (8,128) rule).
    tb = B if B <= 8 else 8
    # Feature (lane) tile: target ~4 MiB per x block so double-buffered
    # in + out (~4x tile) stays well under even v7x's VMEM; multiple of 128.
    target_bytes = 4 * 1024 * 1024
    max_c = max(128, (target_bytes // (tb * itemsize)) // 128 * 128)
    tile_c = C if C <= max_c else max_c
    return int(tb), int(tile_c)


def drop_path_pallas(x, drop_prob, key, training=True):
    """DropPath forward. x: (B, ...). Returns array of same shape/dtype."""
    if drop_prob is None or drop_prob == 0.0 or not training:
        return x

    keep_prob = 1.0 - drop_prob
    orig_shape = x.shape
    B = orig_shape[0]
    C = 1
    for d in orig_shape[1:]:
        C *= int(d)

    # Lane-dense 2D layout: all feature dims flattened onto the lane axis.
    xf = x.reshape(B, C)

    # Per-sample binarized mask, identical math to the PyTorch reference:
    # floor(keep_prob + uniform[0,1)) in {0,1}; fold the 1/keep_prob scale in.
    u = jax.random.uniform(key, (B,), dtype=jnp.float32)
    scale = (jnp.floor(keep_prob + u) / keep_prob).astype(jnp.float32).reshape(B, 1)

    itemsize = xf.dtype.itemsize
    tb, tile_c = _choose_tiles(B, C, itemsize)
    grid = (pl.cdiv(B, tb), pl.cdiv(C, tile_c))

    out = pl.pallas_call(
        _drop_path_kernel,
        out_shape=jax.ShapeDtypeStruct((B, C), xf.dtype),
        grid=grid,
        in_specs=[
            pl.BlockSpec((tb, 1), lambda b, c: (b, 0)),        # per-sample scales
            pl.BlockSpec((tb, tile_c), lambda b, c: (b, c)),   # x tile
        ],
        out_specs=pl.BlockSpec((tb, tile_c), lambda b, c: (b, c)),
        compiler_params=pltpu.CompilerParams(
            dimension_semantics=("parallel", "parallel"),
            vmem_limit_bytes=48 << 20,
        ),
        cost_estimate=pl.CostEstimate(
            flops=B * C,
            transcendentals=0,
            bytes_accessed=2 * B * C * itemsize + B * 4,
        ),
    )(scale, xf)
    return out.reshape(orig_shape)


def _drop_path_ref(x, drop_prob, key, training=True):
    """Pure-JAX reference (same RNG draw / math as the PyTorch module)."""
    if drop_prob is None or drop_prob == 0.0 or not training:
        return x
    keep_prob = 1.0 - drop_prob
    B = x.shape[0]
    u = jax.random.uniform(key, (B,), dtype=jnp.float32)
    mask = jnp.floor(keep_prob + u).reshape((B,) + (1,) * (x.ndim - 1))
    return (x.astype(jnp.float32) / keep_prob * mask).astype(x.dtype)


if __name__ == "__main__":
    key = jax.random.PRNGKey(0)
    kx, kd, kx2, kd2 = jax.random.split(key, 4)
    drop_prob = 0.25

    # Case 1: ViT-style (B, N, D) = (2, 8, 32), f32.
    x = jax.random.normal(kx, (2, 8, 32), dtype=jnp.float32)
    y = jax.block_until_ready(drop_path_pallas(x, drop_prob, kd, training=True))
    y_ref = _drop_path_ref(x, drop_prob, kd, training=True)
    assert y.shape == x.shape and y.dtype == x.dtype
    assert jnp.allclose(y, y_ref, atol=1e-6, rtol=1e-6)

    # Eval mode / p=0 is the identity.
    y_eval = jax.block_until_ready(drop_path_pallas(x, drop_prob, kd, training=False))
    assert jnp.array_equal(y_eval, x)
    y_p0 = jax.block_until_ready(drop_path_pallas(x, 0.0, kd, training=True))
    assert jnp.array_equal(y_p0, x)

    # Case 2: 4D input (B, C, H, W) = (2, 4, 16, 16) -> flattened feature axis.
    x2 = jax.random.normal(kx2, (2, 4, 16, 16), dtype=jnp.float32)
    y2 = jax.block_until_ready(drop_path_pallas(x2, 0.5, kd2, training=True))
    y2_ref = _drop_path_ref(x2, 0.5, kd2, training=True)
    assert y2.shape == x2.shape and y2.dtype == x2.dtype
    assert jnp.allclose(y2, y2_ref, atol=1e-6, rtol=1e-6)

    print("KERNEL_OK")
</pallas_src>

<mosaic_0001>
module attributes {stable_mosaic.version = 11 : i64} {
  func.func @_drop_path_kernel(%arg0: i32, %arg1: i32, %arg2: memref<2x1xf32, #tpu.memory_space<vmem>>, %arg3: memref<2x256xf32, #tpu.memory_space<vmem>>, %arg4: memref<2x256xf32, #tpu.memory_space<vmem>>) attributes {dimension_semantics = [#tpu.dimension_semantics<parallel>, #tpu.dimension_semantics<parallel>], iteration_bounds = array<i64: 1, 1>, scalar_prefetch = 0 : i64, scratch_operands = 0 : i64, tpu.core_type = #tpu.core_type<tc>, window_params = [{transform_indices = @transform_0, window_bounds = array<i64: 2, 1>}, {transform_indices = @transform_1, window_bounds = array<i64: 2, 256>}, {transform_indices = @transform_2, window_bounds = array<i64: 2, 256>}]} {
    %c0 = arith.constant 0 : index
    %c0_0 = arith.constant 0 : index
    %0 = vector.load %arg3[%c0, %c0_0] : memref<2x256xf32, #tpu.memory_space<vmem>>, vector<2x256xf32>
    %c0_1 = arith.constant 0 : index
    %c0_2 = arith.constant 0 : index
    %1 = vector.load %arg2[%c0_1, %c0_2] : memref<2x1xf32, #tpu.memory_space<vmem>>, vector<2x1xf32>
    %2 = vector.broadcast %1 : vector<2x1xf32> to vector<2x256xf32>
    %3 = arith.mulf %0, %2 : vector<2x256xf32>
    %c0_3 = arith.constant 0 : index
    %c0_4 = arith.constant 0 : index
    %4 = vector.load %arg4[%c0_3, %c0_4] : memref<2x256xf32, #tpu.memory_space<vmem>>, vector<2x256xf32>
    tpu.vector_store %arg4[%c0_3, %c0_4], %3 {strides = array<i32>} : memref<2x256xf32, #tpu.memory_space<vmem>>, vector<2x256xf32>,
    return
  }
  func.func @transform_0(%arg0: i32, %arg1: i32) -> (i32, i32) {
    %c0_i32 = arith.constant 0 : i32
    %c0_i32_0 = arith.constant 0 : i32
    return %arg0, %c0_i32 : i32, i32
  }
  func.func @transform_1(%arg0: i32, %arg1: i32) -> (i32, i32) {
    %c0_i32 = arith.constant 0 : i32
    return %arg0, %arg1 : i32, i32
  }
  func.func @transform_2(%arg0: i32, %arg1: i32) -> (i32, i32) {
    %c0_i32 = arith.constant 0 : i32
    return %arg0, %arg1 : i32, i32
  }
}

</mosaic_0001>

<bundles_post_ra>
// kernel: tpu_custom_call.1
= control target key start
LH: loop header
LB: loop body
LE: loop exit
PB: predicated region body
PF: predicated region fallthrough
CT: control target
= control target key end

     0   :  { %7 = vsyncpa [#allocation3], 0  ;;  %s141_s0 = inlined_call_operand.vmem [shape: f32[2,1], index: 0, kind: input, shape index: {}]   ;;  %s142_s1 = inlined_call_operand.hbm [shape: f32[2,256], index: 1, kind: input, shape index: {}]   ;;  %s143_s2 = inlined_call_operand.hbm [shape: f32[2,256], index: 2, kind: output, shape index: {}]  }
   0x1   :  { %8 = vsyncpa [#allocation4], 0  ;;  %s16_s11 = sshll.u32 %s142_s1, 4  ;;  %s113_s12 = smov [#allocation2]   ;;  %s17_s11 = int_to_ptr.hbm [resolvable:$true] %s16_s11 }
   0x2   :  { %s18_s13 = sshll.u32 %s113_s12, 4  ;;  %s19_s13 = int_to_ptr.vmem [resolvable:$true] %s18_s13 }
   0x3   :  { %21 = dma.hbm_to_vmem [thread:$0]  %s17_s11, 64, %s19_s13, [#allocation3]  }
   0x4   :  { %109 = dma.done.wait [#allocation3], 64  }
   0x5   :  { %110 = vsyncadd [#allocation3], 4294967232  ;;  %v114_v0 = vmov 0   ;;  %v27_v1 = vld [vmem:[%s141_s0] sm:$0x3]  ;;  %s116_s1 = smov [#allocation5]  }
   0x6   :  { %60 = vset.pattern.permute.xlu0 %v114_v0  ;;  %v115_v2 = vmov 269488144   ;;  %v26_v6 = vld [vmem:[#allocation2] sm:$0xf]  ;;  %s44_s16 = sshll.u32 %s116_s1, 4  ;;  %s46_s19 = sshll.u32 %s143_s2, 4  ;;  %s45_s16 = int_to_ptr.vmem [resolvable:$true] %s44_s16  ;;  %s47_s19 = int_to_ptr.hbm [resolvable:$true] %s46_s19 }
   0x7   :  { %30 = vperm.xlu0 %60, %v27_v1   ;;  %v33_v3 = vunpack.c.l.s4 %v115_v2 }
   0x9   :  { %v34_v4 = vunpack.c.0.s8 %v33_v3 }
  0x79   :  { %v31_v5 = vpop.permute.xlu0 %30 }
  0x7a   :  { %v35_v7 = vperm.slane %v31_v5, %v34_v4 }
  0x7c   :  { %v37_v8 = vmul.f32 %v35_v7, %v26_v6 }
  0x7e   :  { %38 = vst [vmem:[#allocation5] sm:$0xf] %v37_v8 }
  0x7f   :  { %49 = dma.vmem_to_hbm [thread:$0]  %s45_s16, 64, %s47_s19, [#allocation4]  }
  0x80   :  { %111 = dma.done.wait [#allocation4], 64  }
  0x81   :  { %112 = vsyncadd [#allocation4], 4294967232 }
  0x82   :  { %54 = vsyncpa [#allocation3], 1 }
  0x83   :  { %55 = vsyncpa [#allocation4], 1 }

</bundles_post_ra>
